<compile_context>
chip_gen: v7x
topology: tpu7x:2x2x1
jax: 0.10.0
libtpu: 0.0.40
codegen_flags: <defaults>
</compile_context>

<pallas_src>
import jax
import jax.numpy as jnp
from jax.experimental import pallas as pl
from jax.experimental.pallas import tpu as pltpu

C_IN = 3
C_OUT = 6
_MAX_TILE = 16 * 1024   # lanes per block; double-buffered VMEM stays ~1.2 MiB
                        # (safe even against v7x's smaller VMEM budget)


def _linear_kernel(w_ref, x_ref, o_ref):
    # w_ref: SMEM (C_OUT, C_IN) scalars
    # x_ref: VMEM (C_IN, T)  lane-dense activations
    # o_ref: VMEM (C_OUT, T) lane-dense output
    x0 = x_ref[0:1, :]   # (1, T)
    x1 = x_ref[1:2, :]
    x2 = x_ref[2:3, :]
    rows = [
        w_ref[j, 0] * x0 + w_ref[j, 1] * x1 + w_ref[j, 2] * x2
        for j in range(C_OUT)
    ]
    # Single full-block store of the (C_OUT, T) tile.
    o_ref[...] = jnp.concatenate(rows, axis=0)


def _choose_tile(m):
    """Pick a lane-dense tile: large, multiple of 128, and (when m allows)
    at least two grid blocks so v7x megacore can split the work."""
    if m <= 128:
        return m                       # single full-extent block
    half = (m + 1) // 2
    half = ((half + 127) // 128) * 128  # round up to a lane multiple
    return min(_MAX_TILE, half)


def model_forward(x, w):
    """x: (B, H, W, C_IN) float32 (channels-last); w: (C_OUT, C_IN) float32.

    Returns (B, H, W, C_OUT) float32 == Linear(x) - zeros == Linear(x).
    """
    B, H, W, cin = x.shape
    assert cin == C_IN
    M = B * H * W

    # Lane-dense layout: long M axis on the lane (last) dimension.
    # (Wrapper-side transpose of a few tens of KiB is negligible.)
    xt = x.reshape(M, C_IN).T          # (C_IN, M)

    tile = _choose_tile(M)
    grid = (pl.cdiv(M, tile),)

    out = pl.pallas_call(
        _linear_kernel,
        out_shape=jax.ShapeDtypeStruct((C_OUT, M), jnp.float32),
        grid=grid,
        in_specs=[
            pl.BlockSpec(memory_space=pltpu.MemorySpace.SMEM),    # 6x3 weights
            pl.BlockSpec((C_IN, tile), lambda i: (0, i)),         # activations
        ],
        out_specs=pl.BlockSpec((C_OUT, tile), lambda i: (0, i)),
        compiler_params=pltpu.CompilerParams(
            dimension_semantics=("parallel",)
        ),
    )(w, xt)

    return out.T.reshape(B, H, W, C_OUT)


if __name__ == "__main__":
    key = jax.random.PRNGKey(0)
    kx, kw = jax.random.split(key)

    # Shapes consistent with the module: batch=2, spatial 24x32, 3 features.
    B, Hh, Ww = 2, 24, 32
    x = jax.random.normal(kx, (B, Hh, Ww, C_IN), dtype=jnp.float32)

    # Deterministic weight init (mimics Linear's uniform(-1/sqrt(in), 1/sqrt(in)))
    bound = 1.0 / (C_IN ** 0.5)
    w = jax.random.uniform(kw, (C_OUT, C_IN), dtype=jnp.float32,
                           minval=-bound, maxval=bound)

    out = model_forward(x, w)
    out = jax.block_until_ready(out)

    # Correctness check against plain-JAX reference (v1 - zeros == v1).
    ref = jnp.einsum("bhwc,oc->bhwo", x, w)
    assert out.shape == (B, Hh, Ww, C_OUT)
    assert jnp.allclose(out, ref, atol=1e-5, rtol=1e-5)

    print("KERNEL_OK")
</pallas_src>

<mosaic_0001>
module attributes {stable_mosaic.version = 11 : i64} {
  func.func @_linear_kernel(%arg0: i32, %arg1: memref<6x3xf32, #tpu.memory_space<smem>>, %arg2: memref<3x768xf32, #tpu.memory_space<vmem>>, %arg3: memref<6x768xf32, #tpu.memory_space<vmem>>) attributes {dimension_semantics = [#tpu.dimension_semantics<parallel>], iteration_bounds = array<i64: 2>, scalar_prefetch = 0 : i64, scratch_operands = 0 : i64, tpu.core_type = #tpu.core_type<tc>, window_params = [{transform_indices = @transform_0, window_bounds = array<i64: 6, 3>}, {transform_indices = @transform_1, window_bounds = array<i64: 3, 768>}, {transform_indices = @transform_2, window_bounds = array<i64: 6, 768>}]} {
    %c0 = arith.constant 0 : index
    %c0_0 = arith.constant 0 : index
    %0 = vector.load %arg2[%c0, %c0_0] : memref<3x768xf32, #tpu.memory_space<vmem>>, vector<1x768xf32>
    %c1 = arith.constant 1 : index
    %c0_1 = arith.constant 0 : index
    %1 = vector.load %arg2[%c1, %c0_1] : memref<3x768xf32, #tpu.memory_space<vmem>>, vector<1x768xf32>
    %c2 = arith.constant 2 : index
    %c0_2 = arith.constant 0 : index
    %2 = vector.load %arg2[%c2, %c0_2] : memref<3x768xf32, #tpu.memory_space<vmem>>, vector<1x768xf32>
    %c0_3 = arith.constant 0 : index
    %c0_4 = arith.constant 0 : index
    %3 = memref.load %arg1[%c0_3, %c0_4] : memref<6x3xf32, #tpu.memory_space<smem>>
    %4 = vector.broadcast %3 : f32 to vector<1x768xf32>
    %5 = arith.mulf %4, %0 : vector<1x768xf32>
    %c0_5 = arith.constant 0 : index
    %c1_6 = arith.constant 1 : index
    %6 = memref.load %arg1[%c0_5, %c1_6] : memref<6x3xf32, #tpu.memory_space<smem>>
    %7 = vector.broadcast %6 : f32 to vector<1x768xf32>
    %8 = arith.mulf %7, %1 : vector<1x768xf32>
    %9 = arith.addf %5, %8 : vector<1x768xf32>
    %c0_7 = arith.constant 0 : index
    %c2_8 = arith.constant 2 : index
    %10 = memref.load %arg1[%c0_7, %c2_8] : memref<6x3xf32, #tpu.memory_space<smem>>
    %11 = vector.broadcast %10 : f32 to vector<1x768xf32>
    %12 = arith.mulf %11, %2 : vector<1x768xf32>
    %13 = arith.addf %9, %12 : vector<1x768xf32>
    %c1_9 = arith.constant 1 : index
    %c0_10 = arith.constant 0 : index
    %14 = memref.load %arg1[%c1_9, %c0_10] : memref<6x3xf32, #tpu.memory_space<smem>>
    %15 = vector.broadcast %14 : f32 to vector<1x768xf32>
    %16 = arith.mulf %15, %0 : vector<1x768xf32>
    %c1_11 = arith.constant 1 : index
    %c1_12 = arith.constant 1 : index
    %17 = memref.load %arg1[%c1_11, %c1_12] : memref<6x3xf32, #tpu.memory_space<smem>>
    %18 = vector.broadcast %17 : f32 to vector<1x768xf32>
    %19 = arith.mulf %18, %1 : vector<1x768xf32>
    %20 = arith.addf %16, %19 : vector<1x768xf32>
    %c1_13 = arith.constant 1 : index
    %c2_14 = arith.constant 2 : index
    %21 = memref.load %arg1[%c1_13, %c2_14] : memref<6x3xf32, #tpu.memory_space<smem>>
    %22 = vector.broadcast %21 : f32 to vector<1x768xf32>
    %23 = arith.mulf %22, %2 : vector<1x768xf32>
    %24 = arith.addf %20, %23 : vector<1x768xf32>
    %c2_15 = arith.constant 2 : index
    %c0_16 = arith.constant 0 : index
    %25 = memref.load %arg1[%c2_15, %c0_16] : memref<6x3xf32, #tpu.memory_space<smem>>
    %26 = vector.broadcast %25 : f32 to vector<1x768xf32>
    %27 = arith.mulf %26, %0 : vector<1x768xf32>
    %c2_17 = arith.constant 2 : index
    %c1_18 = arith.constant 1 : index
    %28 = memref.load %arg1[%c2_17, %c1_18] : memref<6x3xf32, #tpu.memory_space<smem>>
    %29 = vector.broadcast %28 : f32 to vector<1x768xf32>
    %30 = arith.mulf %29, %1 : vector<1x768xf32>
    %31 = arith.addf %27, %30 : vector<1x768xf32>
    %c2_19 = arith.constant 2 : index
    %c2_20 = arith.constant 2 : index
    %32 = memref.load %arg1[%c2_19, %c2_20] : memref<6x3xf32, #tpu.memory_space<smem>>
    %33 = vector.broadcast %32 : f32 to vector<1x768xf32>
    %34 = arith.mulf %33, %2 : vector<1x768xf32>
    %35 = arith.addf %31, %34 : vector<1x768xf32>
    %c3 = arith.constant 3 : index
    %c0_21 = arith.constant 0 : index
    %36 = memref.load %arg1[%c3, %c0_21] : memref<6x3xf32, #tpu.memory_space<smem>>
    %37 = vector.broadcast %36 : f32 to vector<1x768xf32>
    %38 = arith.mulf %37, %0 : vector<1x768xf32>
    %c3_22 = arith.constant 3 : index
    %c1_23 = arith.constant 1 : index
    %39 = memref.load %arg1[%c3_22, %c1_23] : memref<6x3xf32, #tpu.memory_space<smem>>
    %40 = vector.broadcast %39 : f32 to vector<1x768xf32>
    %41 = arith.mulf %40, %1 : vector<1x768xf32>
    %42 = arith.addf %38, %41 : vector<1x768xf32>
    %c3_24 = arith.constant 3 : index
    %c2_25 = arith.constant 2 : index
    %43 = memref.load %arg1[%c3_24, %c2_25] : memref<6x3xf32, #tpu.memory_space<smem>>
    %44 = vector.broadcast %43 : f32 to vector<1x768xf32>
    %45 = arith.mulf %44, %2 : vector<1x768xf32>
    %46 = arith.addf %42, %45 : vector<1x768xf32>
    %c4 = arith.constant 4 : index
    %c0_26 = arith.constant 0 : index
    %47 = memref.load %arg1[%c4, %c0_26] : memref<6x3xf32, #tpu.memory_space<smem>>
    %48 = vector.broadcast %47 : f32 to vector<1x768xf32>
    %49 = arith.mulf %48, %0 : vector<1x768xf32>
    %c4_27 = arith.constant 4 : index
    %c1_28 = arith.constant 1 : index
    %50 = memref.load %arg1[%c4_27, %c1_28] : memref<6x3xf32, #tpu.memory_space<smem>>
    %51 = vector.broadcast %50 : f32 to vector<1x768xf32>
    %52 = arith.mulf %51, %1 : vector<1x768xf32>
    %53 = arith.addf %49, %52 : vector<1x768xf32>
    %c4_29 = arith.constant 4 : index
    %c2_30 = arith.constant 2 : index
    %54 = memref.load %arg1[%c4_29, %c2_30] : memref<6x3xf32, #tpu.memory_space<smem>>
    %55 = vector.broadcast %54 : f32 to vector<1x768xf32>
    %56 = arith.mulf %55, %2 : vector<1x768xf32>
    %57 = arith.addf %53, %56 : vector<1x768xf32>
    %c5 = arith.constant 5 : index
    %c0_31 = arith.constant 0 : index
    %58 = memref.load %arg1[%c5, %c0_31] : memref<6x3xf32, #tpu.memory_space<smem>>
    %59 = vector.broadcast %58 : f32 to vector<1x768xf32>
    %60 = arith.mulf %59, %0 : vector<1x768xf32>
    %c5_32 = arith.constant 5 : index
    %c1_33 = arith.constant 1 : index
    %61 = memref.load %arg1[%c5_32, %c1_33] : memref<6x3xf32, #tpu.memory_space<smem>>
    %62 = vector.broadcast %61 : f32 to vector<1x768xf32>
    %63 = arith.mulf %62, %1 : vector<1x768xf32>
    %64 = arith.addf %60, %63 : vector<1x768xf32>
    %c5_34 = arith.constant 5 : index
    %c2_35 = arith.constant 2 : index
    %65 = memref.load %arg1[%c5_34, %c2_35] : memref<6x3xf32, #tpu.memory_space<smem>>
    %66 = vector.broadcast %65 : f32 to vector<1x768xf32>
    %67 = arith.mulf %66, %2 : vector<1x768xf32>
    %68 = arith.addf %64, %67 : vector<1x768xf32>
    %69 = tpu.concatenate %13, %24, %35, %46, %57, %68 in 0 : vector<1x768xf32>, vector<1x768xf32>, vector<1x768xf32>, vector<1x768xf32>, vector<1x768xf32>, vector<1x768xf32> -> vector<6x768xf32>
    %c0_36 = arith.constant 0 : index
    %c0_37 = arith.constant 0 : index
    %70 = vector.load %arg3[%c0_36, %c0_37] : memref<6x768xf32, #tpu.memory_space<vmem>>, vector<6x768xf32>
    tpu.vector_store %arg3[%c0_36, %c0_37], %69 {strides = array<i32>} : memref<6x768xf32, #tpu.memory_space<vmem>>, vector<6x768xf32>,
    return
  }
  func.func @transform_0(%arg0: i32) -> (i32, i32) {
    %c0_i32 = arith.constant 0 : i32
    %c0_i32_0 = arith.constant 0 : i32
    %c0_i32_1 = arith.constant 0 : i32
    return %c0_i32, %c0_i32_0 : i32, i32
  }
  func.func @transform_1(%arg0: i32) -> (i32, i32) {
    %c0_i32 = arith.constant 0 : i32
    %c0_i32_0 = arith.constant 0 : i32
    return %c0_i32, %arg0 : i32, i32
  }
  func.func @transform_2(%arg0: i32) -> (i32, i32) {
    %c0_i32 = arith.constant 0 : i32
    %c0_i32_0 = arith.constant 0 : i32
    return %c0_i32, %arg0 : i32, i32
  }
}

</mosaic_0001>

<bundles_post_ra>
// kernel: tpu_custom_call.1
= control target key start
LH: loop header
LB: loop body
LE: loop exit
PB: predicated region body
PF: predicated region fallthrough
CT: control target
= control target key end

     0   :  { %7 = vsyncpa [#allocation5], 0  ;;  %s1191_s0 = inlined_call_operand.vmem [shape: f32[6,3], index: 0, kind: input, shape index: {}]   ;;  %s1192_s1 = inlined_call_operand.hbm [shape: f32[3,1536], index: 1, kind: input, shape index: {}]   ;;  %s1193_s2 = inlined_call_operand.hbm [shape: f32[6,1536], index: 2, kind: output, shape index: {}]  }
   0x1   :  { %8 = vsyncpa [#allocation3], 0 }
   0x2   :  { %10 = vsyncpa [#allocation3 + $0x1], 0 }
   0x3   :  { %11 = vsyncpa [#allocation4], 0 }
   0x4   :  { %13 = vsyncpa [#allocation4 + $0x1], 0  ;;  %s797_s9 = smov 0   ;;  %s799_s10 = smov 0  }
   0x5   :  { %s801_s11 = smov 0   ;;  %s803_s12 = smov 0  }
   0x6 LB: > { %s818_s13 = sadd.s32 4294967295, %s777_s12   ;;  %s571_s14 = sadd.s32 4294967294, %s777_s12   ;;  %s777_s12 = sphi %s803_s12, %s1214_s12   ;;  %s773_s11 = sphi %s801_s11, %s1213_s11   ;;  %s769_s10 = sphi %s799_s10, %s1212_s10   ;;  %s765_s9 = sphi %s797_s9, %s1211_s9  }
   0x7   : > { %p60_p0 = scmp.ne.s32.totalorder %s769_s10, %s765_s9  ;;  %p1194_p1 = scmp.eq.s32.totalorder %s818_s13, 0 }
   0x8   : > { %p90_p3 = scmp.eq.s32.totalorder %s571_s14, 1  ;;  %p572_p5 = scmp.ge.s32.totalorder %s777_s12, 1 }
   0x9   : > { %p827_p4 = por %p1194_p1, %p60_p0  ;;  %p97_p7 = scmp.lt.s32.totalorder %s777_s12, 3 }
   0xa   : > { %p832_p6 = por %p90_p3, %p60_p0  ;;  %s110_s19 = sshll.u32 %s1191_s0, 4  ;;  %s111_s19 = int_to_ptr.vmem [resolvable:$true] %s110_s19 }
   0xb   : > { %s1197_s15 = scalar_select %p827_p4, 1, 0 }
   0xc   : > { %s1198_s16 = scalar_select %p832_p6, 1, 0 }
   0xd   : > { %p840_p8 = pnand %p572_p5, %p97_p7  ;;  %s848_s21 = sadd.s32 1, %s777_s12  }
   0xe   : > { %s44_s23 = ssub.s32 %s777_s12, %s848_s21  ;;  %s47_s25 = sadd.s32 1, %s773_s11 }
   0xf   : > { %p613_p10 = pneg %p840_p8  ;;  %p858_p12 = scmp.eq.s32.totalorder %s44_s23, 0 }
  0x10   : > { %p54_p13 = scmp.ne.s32.totalorder %s773_s11, %s769_s10  ;;  %s662_s26 = scalar_lea.vmem %s111_s19, 128 }
  0x11   : > { %p852_p11 = pnand %p613_p10, %p1194_p1  ;;  %p663_p0 = scmp.ne.s32.totalorder %s111_s19, %s662_s26 }
  0x12   : > { %p670_p9 = scmp.lt.s32.totalorder %s111_s19, %s111_s19  ;;  %p671_p2 = scmp.lt.s32.totalorder %s662_s26, %s662_s26 }
  0x13   : > { %p664_p3 = pneg %p852_p11 }
  0x14   : > { %p672_p10 = por %p671_p2, %p670_p9 }
  0x15   : > { %p665_p5 = pnand %p664_p3, %p663_p0 }
  0x17   : > { %p666_p7 = pneg %p665_p5 }
  0x19   : > { %p673_p1 = pnand %p672_p10, %p666_p7 }
  0x1b   : > { %676 = shalt.err (!%p673_p1)
}
  0x1c   : > { %s779_s27 = smov [#allocation2]   ;;  %p55_p2 = scmp.eq.s32.totalorder %s777_s12, 0 }
  0x1d   : > { %616 = dma.vmem_to_smem (!%p852_p11), %s111_s19, 128, %s779_s27, [#allocation5]  }
  0x1e   : > { %s872_s28 = scalar_select %p858_p12, %s773_s11, %s47_s25  }
  0x1f   : > { %p1202_p1 = scmp.eq.s32.totalorder %s818_s13, 1  ;;  %p626_p0 = scmp.lt.s32.totalorder %s777_s12, 2 }
  0x20   : > { %s121_s30 = sand.u32 1, %s773_s11   ;;  %p56_p3 = por %p55_p2, %p54_p13 }
  0x21   : > { %p880_p9 = por %p1202_p1, %p54_p13  ;;  %s602_s3 = smul.u32 24, %s121_s30 }
  0x22   : > { %s600_s4 = smul.u32 384, %s777_s12  ;;  %p890_p5 = pnand %p626_p0, %p56_p3 }
  0x23   : > { %s1203_s29 = scalar_select %p880_p9, 1, 0 }
  0x24   : > { %s897_s8 = scalar_lea.hbm %s1192_s1, %s600_s4  ;;  %s125_s14 = scalar_lea.vmem [#allocation6], %s602_s3 }
  0x25   : > { %s133_s17 = sshll.u32 %s125_s14, 4  ;;  %s122_s18 = scalar_lea.sflag [#allocation3], %s121_s30  ;;  %s899_s17 = int_to_ptr.vmem [resolvable:$true] %s133_s17 }
  0x26   : > { %s677_s19 = scalar_lea.hbm %s897_s8, 384  ;;  %p679_p12 = pneg %p890_p5 }
  0x27   : > { %p678_p11 = scmp.ne.s32.totalorder %s897_s8, %s677_s19  ;;  %s682_s24 = scalar_lea.hbm %s1192_s1, 768 }
  0x28   : > { %p683_p10 = scmp.lt.u32.totalorder %s897_s8, %s1192_s1  ;;  %p684_p2 = scmp.lt.u32.totalorder %s682_s24, %s677_s19 }
  0x29   : > { %p680_p13 = pnand %p679_p12, %p678_p11  ;;  %p686_p0 = scmp.lt.u32.totalorder %s677_s19, %s897_s8 }
  0x2a   : > { %p685_p1 = por %p684_p2, %p683_p10 }
  0x2b   : > { %p681_p7 = pneg %p680_p13 }
  0x2c   : > { %p687_p3 = por %p686_p0, %p685_p1 }
  0x2e   : > { %p688_p6 = pnand %p687_p3, %p681_p7 }
  0x30   : > { %691 = shalt.err (!%p688_p6)
}
  0x31   : > { %s692_s27 = scalar_lea.vmem %s899_s17, 384  ;;  %s780_s30 = smov [#allocation6]  }
  0x32   : > { %p693_p11 = scmp.ne.s32.totalorder %s899_s17, %s692_s27  ;;  %s697_s3 = sshll.u32 %s780_s30, 4  ;;  %s698_s3 = int_to_ptr.vmem [resolvable:$false] %s697_s3 }
  0x33   : > { %s699_s4 = scalar_lea.vmem %s698_s3, 768  ;;  %p700_p4 = scmp.lt.s32.totalorder %s899_s17, %s698_s3 }
  0x34   : > { %p695_p13 = pnand %p693_p11, %p679_p12  ;;  %p701_p10 = scmp.lt.s32.totalorder %s699_s4, %s692_s27 }
  0x36   : > { %p696_p9 = pneg %p695_p13  ;;  %p702_p2 = por %p701_p10, %p700_p4 }
  0x38   : > { %p703_p1 = pnand %p702_p2, %p696_p9 }
  0x3a   : > { %706 = shalt.err (!%p703_p1)
}
  0x3b   : > { %620 = dma.hbm_to_vmem [thread:$0]  (!%p890_p5), %s897_s8, 384, %s899_s17, %s122_s18  }
  0x3c   : > { %142 = sbr.rel (%p840_p8) target bundleno = 127 (0x7f), region = 28  ;;  %p1205_p6 = scmp.eq.s32.totalorder (!%p840_p8), %s818_s13, 0 }
  0x43   : > { %752 = dma.done.wait (%p1205_p6), [#allocation5], 128   ;;  %p1206_p12 = pmov %p1205_p6 }
  0x44   : > { %s933_s6 = sand.u32 1, %s769_s10   ;;  %p1207_p4 = scmp.ne.s32.totalorder %s1197_s15, 0 }
  0x45   : > { %754 = vsyncadd (%p1206_p12), [#allocation5], 4294967168  ;;  %s603_s7 = smul.u32 24, %s933_s6  ;;  %s149_s5 = scalar_lea.sflag [#allocation3], %s933_s6 }
  0x47   : > { %s152_s14 = scalar_lea.vmem [#allocation6], %s603_s7 }
  0x48   : > { %756 = dma.done.wait (%p1207_p4), %s149_s5, 384  }
  0x49   : > { %758 = vsyncadd (%p1207_p4), %s149_s5, 4294966912 }
  0x4a   : > { %157 = sfence }
  0x4b   : > { %s181_s20 = sld [smem:[#allocation2]]  ;;  %v248_v0 = vlaneseq  ;;  %v941_v1 = vld [vmem:[%s152_s14] ss:$4 sm:$0x3f]  ;;  %s580_s8 = sld [smem:[#allocation2 + $0x1]]  ;;  %vm433_vm0 = vcmask 1040384  }
  0x4c   : > { %s581_s17 = sld [smem:[#allocation2 + $0x2]]  ;;  %s582_s18 = sld [smem:[#allocation2 + $0x80]]  ;;  %v943_v3 = vld [vmem:[%s152_s14 + $0x1] ss:$4 sm:$0x3f]  ;;  %vm440_vm1 = vcmask 1041408  }
  0x4d   : > { %v249_v2 = vshrl.u32 %v248_v0, 7  ;;  %s945_s19 = sld [smem:[#allocation2 + $0x81]]  ;;  %s947_s22 = sld [smem:[#allocation2 + $0x82]]  ;;  %v949_v4 = vld [vmem:[%s152_s14 + $0x2] ss:$4 sm:$0x3f] }
  0x4e   : > { %s951_s23 = sld [smem:[#allocation2 + $0x100]]  ;;  %s953_s15 = sld [smem:[#allocation2 + $0x101]]  ;;  %vm447_vm2 = vcmask 1042432   ;;  %vm454_vm3 = vcmask 1043456   ;;  %vm461_vm4 = vcmask 1044480  }
  0x4f   : > { %s955_s24 = sld [smem:[#allocation2 + $0x102]]  ;;  %s957_s25 = sld [smem:[#allocation2 + $0x180]]  ;;  %v959_v6 = vsub.s32 0, %v249_v2  ;;  %v966_v8 = vsub.s32 1, %v249_v2  ;;  %v968_v9 = vsub.s32 2, %v249_v2  ;;  %v974_v11 = vsub.s32 3, %v249_v2 }
  0x50   : > { %s962_s26 = sld [smem:[#allocation2 + $0x181]]  ;;  %s964_s27 = sld [smem:[#allocation2 + $0x182]]  ;;  %v976_v12 = vsub.s32 4, %v249_v2  ;;  %v983_v16 = vsub.s32 5, %v249_v2 }
  0x51   : > { %v182_v5 = vstv %s181_s20  ;;  %v185_v10 = vstv %s580_s8  ;;  %s970_s30 = sld [smem:[#allocation2 + $0x200]]  ;;  %s972_s3 = sld [smem:[#allocation2 + $0x201]] }
  0x52   : > { %v183_v7 = vmul.f32 %v182_v5, %v941_v1  ;;  %v186_v13 = vmul.f32 %v943_v3, %v185_v10  ;;  %v189_v14 = vstv %s581_s17  ;;  %v193_v15 = vstv %s582_s18  ;;  %s979_s4 = sld [smem:[#allocation2 + $0x202]]  ;;  %s981_s7 = sld [smem:[#allocation2 + $0x280]] }
  0x53   : > { %v190_v17 = vmul.f32 %v949_v4, %v189_v14  ;;  %v194_v18 = vmul.f32 %v193_v15, %v941_v1  ;;  %v196_v19 = vstv %s945_s19  ;;  %v200_v20 = vstv %s947_s22  ;;  %s989_s5 = sld [smem:[#allocation2 + $0x281]]  ;;  %s991_s14 = sld [smem:[#allocation2 + $0x282]] }
  0x54   : > { %v187_v21 = vadd.f32 %v186_v13, %v183_v7  ;;  %v197_v22 = vmul.f32 %v943_v3, %v196_v19  ;;  %v201_v23 = vmul.f32 %v949_v4, %v200_v20  ;;  %v204_v24 = vstv %s951_s23  ;;  %s604_s20 = smul.u32 48, %s933_s6  ;;  %s475_s23 = scalar_lea.sflag [#allocation4], %s933_s6 }
  0x55   : > { %v205_v25 = vmul.f32 %v204_v24, %v941_v1  ;;  %v207_v26 = vstv %s953_s15  ;;  %v211_v27 = vstv %s955_s24  ;;  %v215_v28 = vstv %s957_s25  ;;  %s601_s17 = smul.u32 768, %s818_s13  ;;  %p1208_p9 = scmp.ne.s32.totalorder %s1203_s29, 0 }
  0x56   : > { %v1000_v29 = vadd.f32 %v190_v17, %v187_v21  ;;  %v198_v30 = vadd.f32 %v197_v22, %v194_v18  ;;  %v208_v31 = vmul.f32 %v943_v3, %v207_v26  ;;  %v212_v32 = vmul.f32 %v949_v4, %v211_v27  ;;  %s1081_s8 = scalar_lea.vmem [#allocation7], %s604_s20  ;;  %s781_s24 = smov [#allocation7]  }
  0x57   : > { %v216_v33 = vmul.f32 %v215_v28, %v941_v1  ;;  %v218_v34 = vstv %s962_s26  ;;  %v222_v35 = vstv %s964_s27  ;;  %v226_v36 = vstv %s970_s30  ;;  %s489_s18 = sshll.u32 %s1081_s8, 4  ;;  %s1145_s22 = scalar_lea.hbm %s1193_s2, %s601_s17  ;;  %s1147_s18 = int_to_ptr.vmem [resolvable:$true] %s489_s18 }
  0x58   : > { %v1008_v37 = vadd.f32 %v201_v23, %v198_v30  ;;  %v209_v38 = vadd.f32 %v208_v31, %v205_v25  ;;  %v219_v39 = vmul.f32 %v943_v3, %v218_v34  ;;  %v223_v40 = vmul.f32 %v949_v4, %v222_v35  ;;  %s707_s15 = scalar_lea.vmem %s1147_s18, 768  ;;  %s711_s25 = sshll.u32 %s781_s24, 4  ;;  %s712_s25 = int_to_ptr.vmem [resolvable:$false] %s711_s25 }
  0x59   : > { %v227_v41 = vmul.f32 %v226_v36, %v941_v1  ;;  %v229_v42 = vstv %s972_s3  ;;  %v233_v43 = vstv %s979_s4  ;;  %v237_v44 = vstv %s981_s7  ;;  %p708_p8 = scmp.ne.s32.totalorder %s1147_s18, %s707_s15  ;;  %s713_s26 = scalar_lea.vmem %s712_s25, 1536 }
  0x5a   : > { %v1016_v45 = vadd.f32 %v212_v32, %v209_v38  ;;  %v220_v46 = vadd.f32 %v219_v39, %v216_v33  ;;  %v230_v47 = vmul.f32 %v943_v3, %v229_v42  ;;  %v234_v48 = vmul.f32 %v949_v4, %v233_v43  ;;  %p714_p0 = scmp.lt.s32.totalorder %s1147_s18, %s712_s25  ;;  %p715_p3 = scmp.lt.s32.totalorder %s713_s26, %s707_s15 }
  0x5b   : > { %v238_v49 = vmul.f32 %v237_v44, %v941_v1  ;;  %v240_v50 = vstv %s989_s5  ;;  %v244_v51 = vstv %s991_s14  ;;  %v251_v52 = vrot.slane %v1000_v29, %v959_v6  ;;  %p709_p5 = pnand %p708_p8, %p1208_p9 }
  0x5c   : > { %v1025_v53 = vadd.f32 %v223_v40, %v220_v46  ;;  %v231_v54 = vadd.f32 %v230_v47, %v227_v41  ;;  %v241_v55 = vmul.f32 %v943_v3, %v240_v50  ;;  %v245_v56 = vmul.f32 %v949_v4, %v244_v51  ;;  %p716_p11 = por %p715_p3, %p714_p0 }
  0x5d   : > { %v282_v57 = vrot.slane %v1008_v37, %v959_v6  ;;  %v313_v58 = vrot.slane %v1016_v45, %v959_v6  ;;  %v255_v59 = vrot.slane %v1000_v29, %v966_v8  ;;  %v286_v60 = vrot.slane %v1008_v37, %v966_v8  ;;  %p710_p7 = pneg %p709_p5 }
  0x5e   : > { %v1038_v61 = vadd.f32 %v234_v48, %v231_v54  ;;  %v242_v62 = vadd.f32 %v241_v55, %v238_v49  ;;  %v344_v63 = vrot.slane %v1025_v53, %v959_v6  ;;  %v317_v0 = vrot.slane %v1016_v45, %v966_v8 }
  0x5f   : > { %v434_v1 = vsel %vm433_vm0, %v251_v52, %v282_v57  ;;  %v348_v2 = vrot.slane %v1025_v53, %v966_v8  ;;  %v435_v3 = vsel %vm433_vm0, %v255_v59, %v286_v60  ;;  %v259_v4 = vrot.slane %v1000_v29, %v968_v9  ;;  %p717_p13 = pnand %p716_p11, %p710_p7 }
  0x60   : > { %v1050_v5 = vadd.f32 %v245_v56, %v242_v62  ;;  %v375_v7 = vrot.slane %v1038_v61, %v959_v6  ;;  %v441_v10 = vsel %vm440_vm1, %v434_v1, %v313_v58  ;;  %v379_v13 = vrot.slane %v1038_v61, %v966_v8 }
  0x61   : > { %v448_v14 = vsel %vm447_vm2, %v441_v10, %v344_v63  ;;  %v442_v15 = vsel %vm440_vm1, %v435_v3, %v317_v0  ;;  %v290_v17 = vrot.slane %v1008_v37, %v968_v9  ;;  %v321_v18 = vrot.slane %v1016_v45, %v968_v9 }
  0x62   : > { %v406_v19 = vrot.slane %v1050_v5, %v959_v6  ;;  %v455_v20 = vsel %vm454_vm3, %v448_v14, %v375_v7  ;;  %v410_v21 = vrot.slane %v1050_v5, %v966_v8  ;;  %v449_v22 = vsel %vm447_vm2, %v442_v15, %v348_v2 }
  0x63   : > { %v456_v23 = vsel %vm454_vm3, %v449_v22, %v379_v13  ;;  %v352_v24 = vrot.slane %v1025_v53, %v968_v9  ;;  %v383_v25 = vrot.slane %v1038_v61, %v968_v9  ;;  %v414_v26 = vrot.slane %v1050_v5, %v968_v9 }
  0x64   : > { %v462_v6 = vsel %vm461_vm4, %v455_v20, %v406_v19  ;;  %v463_v27 = vsel %vm461_vm4, %v456_v23, %v410_v21  ;;  %v436_v28 = vsel %vm433_vm0, %v259_v4, %v290_v17  ;;  %v263_v8 = vrot.slane %v1000_v29, %v974_v11 }
  0x65   : > { %468 = vst [vmem:[%s1081_s8] sm:$0x3f] %v462_v6  ;;  %469 = vst [vmem:[%s1081_s8 + $0x8] sm:$0x3f] %v463_v27  ;;  %v443_v30 = vsel %vm440_vm1, %v436_v28, %v321_v18  ;;  %v294_v9 = vrot.slane %v1008_v37, %v974_v11  ;;  %v325_v31 = vrot.slane %v1016_v45, %v974_v11 }
  0x66   : > { %v356_v32 = vrot.slane %v1025_v53, %v974_v11  ;;  %v450_v33 = vsel %vm447_vm2, %v443_v30, %v352_v24  ;;  %v387_v34 = vrot.slane %v1038_v61, %v974_v11  ;;  %v418_v35 = vrot.slane %v1050_v5, %v974_v11 }
  0x67   : > { %v267_v36 = vrot.slane %v1000_v29, %v976_v12  ;;  %v457_v38 = vsel %vm454_vm3, %v450_v33, %v383_v25  ;;  %v437_v39 = vsel %vm433_vm0, %v263_v8, %v294_v9  ;;  %v298_v40 = vrot.slane %v1008_v37, %v976_v12 }
  0x68   : > { %v329_v41 = vrot.slane %v1016_v45, %v976_v12  ;;  %v464_v42 = vsel %vm461_vm4, %v457_v38, %v414_v26  ;;  %v444_v43 = vsel %vm440_vm1, %v437_v39, %v325_v31  ;;  %v360_v11 = vrot.slane %v1025_v53, %v976_v12 }
  0x69   : > { %v391_v44 = vrot.slane %v1038_v61, %v976_v12  ;;  %470 = vst [vmem:[%s1081_s8 + $0x10] sm:$0x3f] %v464_v42  ;;  %v451_v46 = vsel %vm447_vm2, %v444_v43, %v356_v32  ;;  %v422_v47 = vrot.slane %v1050_v5, %v976_v12  ;;  %v438_v48 = vsel %vm433_vm0, %v267_v36, %v298_v40 }
  0x6a   : > { %v271_v49 = vrot.slane %v1000_v29, %v983_v16  ;;  %v458_v50 = vsel %vm454_vm3, %v451_v46, %v387_v34  ;;  %v445_v51 = vsel %vm440_vm1, %v438_v48, %v329_v41  ;;  %v302_v52 = vrot.slane %v1008_v37, %v983_v16 }
  0x6b   : > { %v333_v54 = vrot.slane %v1016_v45, %v983_v16  ;;  %v465_v55 = vsel %vm461_vm4, %v458_v50, %v418_v35  ;;  %v452_v12 = vsel %vm447_vm2, %v445_v51, %v360_v11  ;;  %v364_v56 = vrot.slane %v1025_v53, %v983_v16 }
  0x6c   : > { %v395_v29 = vrot.slane %v1038_v61, %v983_v16  ;;  %471 = vst [vmem:[%s1081_s8 + $0x18] sm:$0x3f] %v465_v55  ;;  %v459_v57 = vsel %vm454_vm3, %v452_v12, %v391_v44  ;;  %v426_v37 = vrot.slane %v1050_v5, %v983_v16  ;;  %v439_v45 = vsel %vm433_vm0, %v271_v49, %v302_v52 }
  0x6d   : > { %v466_v58 = vsel %vm461_vm4, %v459_v57, %v422_v47  ;;  %v446_v53 = vsel %vm440_vm1, %v439_v45, %v333_v54 }
  0x6e   : > { %472 = vst [vmem:[%s1081_s8 + $0x20] sm:$0x3f] %v466_v58  ;;  %v453_v59 = vsel %vm447_vm2, %v446_v53, %v364_v56 }
  0x6f   : > { %v460_v60 = vsel %vm454_vm3, %v453_v59, %v395_v29 }
  0x70   : > { %v467_v16 = vsel %vm461_vm4, %v460_v60, %v426_v37 }
  0x71   : > { %473 = vst [vmem:[%s1081_s8 + $0x28] sm:$0x3f] %v467_v16 }
  0x72   : > { %720 = shalt.err (!%p717_p13)
}
  0x73   : > { %s721_s6 = scalar_lea.hbm %s1145_s22, 768  ;;  %s725_s3 = scalar_lea.hbm %s1193_s2, 1536 }
  0x74   : > { %p722_p10 = scmp.ne.s32.totalorder %s1145_s22, %s721_s6  ;;  %p726_p6 = scmp.lt.u32.totalorder %s1145_s22, %s1193_s2 }
  0x75   : > { %p727_p12 = scmp.lt.u32.totalorder %s725_s3, %s721_s6  ;;  %p729_p8 = scmp.lt.u32.totalorder %s721_s6, %s1145_s22 }
  0x76   : > { %p723_p2 = pnand %p722_p10, %p1208_p9 }
  0x77   : > { %p728_p4 = por %p727_p12, %p726_p6 }
  0x78   : > { %p724_p1 = pneg %p723_p2 }
  0x79   : > { %p730_p5 = por %p729_p8, %p728_p4 }
  0x7b   : > { %p731_p7 = pnand %p730_p5, %p724_p1 }
  0x7d   : > { %734 = shalt.err (!%p731_p7)
}
  0x7e   : > { %611 = dma.vmem_to_hbm [thread:$0]  (%p1208_p9), %s1147_s18, 768, %s1145_s22, %s475_s23  }
  0x7f PF: > { %s501_s5 = sand.u32 1, %s765_s9   ;;  %p1209_p0 = scmp.ne.s32.totalorder %s1198_s16, 0 }
  0x80   : > { %p1210_p3 = scmp.ge.s32.totalorder %s777_s12, 2  ;;  %s502_s14 = scalar_lea.sflag [#allocation4], %s501_s5 }
  0x82   : > { %p622_p11 = pnand %p1210_p3, %p1209_p0 }
  0x84   : > { %760 = dma.done.wait (!%p622_p11), %s502_s14, 768  }
  0x85   : > { %762 = vsyncadd (!%p622_p11), %s502_s14, 4294966528  ;;  %p16_p13 = scmp.ge.s32.totalorder %s848_s21, 4   ;;  %s1211_s9 = smov %s769_s10 }
  0x86   : > { %s1212_s10 = smov %s773_s11  ;;  %s1213_s11 = smov %s872_s28 }
  0x87   : > { %s1214_s12 = smov %s848_s21  ;;  %18 = sbr.rel (!%p16_p13) target bundleno = 6 (0x6), region = 80 }
  0x8e   :  { %507 = vsyncpa [#allocation3], 1 }
  0x8f   :  { %509 = vsyncpa [#allocation3 + $0x1], 1 }
  0x90   :  { %510 = vsyncpa [#allocation4], 1 }
  0x91   :  { %512 = vsyncpa [#allocation4 + $0x1], 1 }
  0x92   :  { %513 = vsyncpa [#allocation5], 1 }
  0x93   :  { %515 = vsyncpa [#allocation5 + $0x1], 1 }

</bundles_post_ra>
